<compile_context>
chip_gen: v7x
topology: tpu7x:2x2x1
jax: 0.10.0
libtpu: 0.0.40
codegen_flags: <defaults>
</compile_context>

<pallas_src>
import functools

import jax
import jax.numpy as jnp
from jax.experimental import pallas as pl
from jax.experimental.pallas import tpu as pltpu

LEAKY_SLOPE = 0.2   # activation passed to MLP_D in ARAE is nn.LeakyReLU(0.2)
BN_EPS = 1e-5
LANE = 128
ROW_ALIGN = 16      # bf16 sublane packing: 16 rows per vreg


def _leaky_relu(x):
    return jnp.where(x > 0, x, LEAKY_SLOPE * x)


def _round_up(n, m):
    return ((n + m - 1) // m) * m


def _vmem_capacity_bytes():
    """Per-core VMEM capacity; conservative fallback if the query fails."""
    try:
        return int(pltpu.get_tpu_info().vmem_capacity_bytes)
    except Exception:
        return 64 << 20   # v7x per-TensorCore VMEM (smallest of v5e/v6e/v7x)


# ---------------------------------------------------------------------------
# Primary path: single pass over the batch with a VMEM cache of the pre-BN
# activations h.  grid = (n_tiles,).
# ---------------------------------------------------------------------------
def _mlp_d_cached_kernel(x_ref, w1_ref, b1_ref, w2_ref, b2_ref, g2_ref,
                         be2_ref, wo_ref, bo_ref, out_ref,
                         hc_ref, s1_ref, s2_ref,
                         *, batch, tile_b, n_tiles, ragged):
    t = pl.program_id(0)

    @pl.when(t == 0)
    def _():
        s1_ref[...] = jnp.zeros_like(s1_ref)
        s2_ref[...] = jnp.zeros_like(s2_ref)

    x = x_ref[...]
    if ragged:
        # Last tile may read past the end of x (garbage rows): zero them
        # BEFORE the first matmul (NaN * 0 would poison the stats).
        row = t * tile_b + jax.lax.broadcasted_iota(jnp.int32, (tile_b, 1), 0)
        valid = row < batch
        x = jnp.where(valid, x, 0.0)
        validf = valid.astype(jnp.float32)

    # layer1 + layer2 linear: bf16 MXU operands, f32 accumulation, f32
    # elementwise (bias / activation).
    h = _leaky_relu(
        jnp.dot(x.astype(jnp.bfloat16), w1_ref[...],
                preferred_element_type=jnp.float32) + b1_ref[...])
    h = jnp.dot(h.astype(jnp.bfloat16), w2_ref[...],
                preferred_element_type=jnp.float32) + b2_ref[...]
    # h: (tile_b, h2p) f32, pre-BatchNorm.

    hm = (h * validf) if ragged else h
    s1_ref[...] += jnp.sum(hm, axis=0, keepdims=True)
    s2_ref[...] += jnp.sum(hm * hm, axis=0, keepdims=True)
    hc_ref[t] = h                      # cache pre-BN activations for the finale

    @pl.when(t == n_tiles - 1)
    def _():
        inv_b = jnp.float32(1.0 / batch)
        mu = s1_ref[...] * inv_b
        # Biased variance; clamp against catastrophic cancellation.
        var = jnp.maximum(s2_ref[...] * inv_b - mu * mu, 0.0)
        scale = g2_ref[...] * jax.lax.rsqrt(var + BN_EPS)
        shift = be2_ref[...] - mu * scale

        def body(l, acc):
            a = _leaky_relu(hc_ref[l] * scale + shift)
            if ragged:
                row_l = (l * tile_b
                         + jax.lax.broadcasted_iota(jnp.int32, (tile_b, 1), 0))
                a = a * (row_l < batch).astype(jnp.float32)
            return acc + jnp.sum(a, axis=0, keepdims=True)

        acc = jax.lax.fori_loop(0, n_tiles, body,
                                jnp.zeros(s1_ref.shape, jnp.float32),
                                unroll=(n_tiles <= 8))
        # mean-before-matmul: mean(a @ Wo + bo, 0) == mean(a, 0) @ Wo + bo.
        h_mean = (acc * inv_b).astype(jnp.bfloat16)
        out_ref[...] = jnp.dot(h_mean, wo_ref[...],
                               preferred_element_type=jnp.float32) + bo_ref[...]


# ---------------------------------------------------------------------------
# Fallback path: two-phase recompute (used when the h cache does not fit
# VMEM).  grid = (phase, n_tiles).  BN scale/shift hoisted out of phase 1.
# ---------------------------------------------------------------------------
def _mlp_d_two_phase_kernel(x_ref, w1_ref, b1_ref, w2_ref, b2_ref, g2_ref,
                            be2_ref, wo_ref, bo_ref, out_ref,
                            s1_ref, s2_ref, acc_ref,
                            *, batch, tile_b, ragged):
    phase = pl.program_id(0)
    t = pl.program_id(1)
    n_tiles = pl.num_programs(1)

    @pl.when(jnp.logical_and(phase == 0, t == 0))
    def _():
        s1_ref[...] = jnp.zeros_like(s1_ref)
        s2_ref[...] = jnp.zeros_like(s2_ref)
        acc_ref[...] = jnp.zeros_like(acc_ref)

    x = x_ref[...]
    if ragged:
        row = t * tile_b + jax.lax.broadcasted_iota(jnp.int32, (tile_b, 1), 0)
        valid = row < batch
        x = jnp.where(valid, x, 0.0)
        validf = valid.astype(jnp.float32)

    h = _leaky_relu(
        jnp.dot(x.astype(jnp.bfloat16), w1_ref[...],
                preferred_element_type=jnp.float32) + b1_ref[...])
    h = jnp.dot(h.astype(jnp.bfloat16), w2_ref[...],
                preferred_element_type=jnp.float32) + b2_ref[...]

    inv_b = jnp.float32(1.0 / batch)

    @pl.when(phase == 0)
    def _():
        hm = (h * validf) if ragged else h
        s1_ref[...] += jnp.sum(hm, axis=0, keepdims=True)
        s2_ref[...] += jnp.sum(hm * hm, axis=0, keepdims=True)

    @pl.when(jnp.logical_and(phase == 1, t == 0))
    def _():
        # Hoisted BN parameter math: overwrite s1 <- scale, s2 <- shift once.
        mu = s1_ref[...] * inv_b
        var = jnp.maximum(s2_ref[...] * inv_b - mu * mu, 0.0)
        scale = g2_ref[...] * jax.lax.rsqrt(var + BN_EPS)
        shift = be2_ref[...] - mu * scale
        s1_ref[...] = scale
        s2_ref[...] = shift

    @pl.when(phase == 1)
    def _():
        a = _leaky_relu(h * s1_ref[...] + s2_ref[...])
        if ragged:
            a = a * validf
        acc_ref[...] += jnp.sum(a, axis=0, keepdims=True)

        @pl.when(t == n_tiles - 1)
        def _():
            h_mean = (acc_ref[...] * inv_b).astype(jnp.bfloat16)
            out_ref[...] = jnp.dot(h_mean, wo_ref[...],
                                   preferred_element_type=jnp.float32) + bo_ref[...]


# ---------------------------------------------------------------------------
# Wrapper
# ---------------------------------------------------------------------------
def mlp_d_forward(x, params, *, tile_b=256, force_two_phase=False,
                  vmem_budget_bytes=None):
    (w1, b1, w2, b2, g2, be2, wo, bo) = params
    batch, ninput = x.shape
    h1 = w1.shape[1]
    h2 = w2.shape[1]
    noutput = wo.shape[1]

    # Lane-dense hidden / output dims (padded channels are exact zeros; with
    # gamma=0 padding, BN scale=shift=0 and Wo padded rows are 0, so the
    # result is unchanged).
    h1p = _round_up(h1, LANE)
    h2p = _round_up(h2, LANE)
    nop = _round_up(noutput, LANE)

    # Batch tile: 16-row aligned (bf16 sublane packing); default 256 fills the
    # 256-wide v6e/v7x MXU M dimension.
    tb = _round_up(min(tile_b, _round_up(batch, ROW_ALIGN)), ROW_ALIGN)
    n_tiles = (batch + tb - 1) // tb
    ragged = (batch % tb) != 0

    # x is streamed unpadded (no wrapper pad+cast pass over HBM); a ragged
    # last tile is masked inside the kernel.
    x = x.astype(jnp.float32)

    f32, bf16 = jnp.float32, jnp.bfloat16
    w1p = jnp.zeros((ninput, h1p), bf16).at[:, :h1].set(w1.astype(bf16))
    b1p = jnp.zeros((1, h1p), f32).at[:, :h1].set(b1.reshape(1, h1).astype(f32))
    w2p = jnp.zeros((h1p, h2p), bf16).at[:h1, :h2].set(w2.astype(bf16))
    b2p = jnp.zeros((1, h2p), f32).at[:, :h2].set(b2.reshape(1, h2).astype(f32))
    g2p = jnp.zeros((1, h2p), f32).at[:, :h2].set(g2.reshape(1, h2).astype(f32))
    be2p = jnp.zeros((1, h2p), f32).at[:, :h2].set(be2.reshape(1, h2).astype(f32))
    wop = jnp.zeros((h2p, nop), bf16).at[:h2, :noutput].set(wo.astype(bf16))
    bop = jnp.zeros((1, nop), f32).at[:, :noutput].set(
        bo.reshape(1, noutput).astype(f32))

    # --- VMEM sizing: pick cached single-pass path if the h cache fits. -----
    weight_bytes = 2 * (2 * (w1p.size + w2p.size + wop.size)         # bf16, 2-buf
                        + 4 * (b1p.size + b2p.size + g2p.size
                               + be2p.size + bop.size))
    x_tile_bytes = 2 * tb * ninput * 4                               # f32, 2-buf
    interm_bytes = tb * (h1p + 2 * h2p) * 4                          # live f32 temps
    stats_bytes = 3 * h2p * 4
    out_bytes = 2 * nop * 4
    base_bytes = weight_bytes + x_tile_bytes + interm_bytes + stats_bytes + out_bytes
    cache_bytes = n_tiles * tb * h2p * 4                             # f32 h cache
    est_cached = base_bytes + cache_bytes

    vmem_cap = _vmem_capacity_bytes()
    if vmem_budget_bytes is None:
        vmem_budget_bytes = int(0.7 * vmem_cap)
    use_cached = (not force_two_phase) and (est_cached <= vmem_budget_bytes)

    est = est_cached if use_cached else base_bytes
    # Raise the scoped VMEM limit (v5e default is only 16 MiB), with headroom,
    # never above ~90% of physical VMEM (64 MiB on v7x, 128 MiB on v5e/v6e).
    vmem_limit = int(min(0.9 * vmem_cap, max(2 * est, 32 << 20)))

    def pinned(shape):
        # Constant-index (resident) weight block.  NOTE: pl.Buffered(1) could
        # halve these blocks' VMEM footprint on v7x; left at the default here.
        return pl.BlockSpec(shape, lambda *_: (0,) * len(shape))

    weight_specs = [
        pinned((ninput, h1p)),            # W1 (bf16, padded)
        pinned((1, h1p)),                 # b1
        pinned((h1p, h2p)),               # W2 (bf16, padded)
        pinned((1, h2p)),                 # b2
        pinned((1, h2p)),                 # BN gamma
        pinned((1, h2p)),                 # BN beta
        pinned((h2p, nop)),               # Wo (bf16, padded)
        pinned((1, nop)),                 # bo (padded)
    ]
    weight_args = (w1p, b1p, w2p, b2p, g2p, be2p, wop, bop)

    pass_flops = 2 * batch * (ninput * h1p + h1p * h2p)
    out_flops = 2 * h2p * nop
    weight_io = (2 * (w1p.size + w2p.size + wop.size)
                 + 4 * (b1p.size + b2p.size + g2p.size + be2p.size + bop.size)
                 + 4 * nop)

    if use_cached:
        kernel = functools.partial(_mlp_d_cached_kernel, batch=batch, tile_b=tb,
                                   n_tiles=n_tiles, ragged=ragged)
        grid_spec = pltpu.PrefetchScalarGridSpec(
            num_scalar_prefetch=0,
            grid=(n_tiles,),
            in_specs=[pl.BlockSpec((tb, ninput), lambda t: (t, 0))] + weight_specs,
            out_specs=pl.BlockSpec((1, nop), lambda t: (0, 0)),
            scratch_shapes=[
                pltpu.VMEM((n_tiles, tb, h2p), jnp.float32),   # pre-BN h cache
                pltpu.VMEM((1, h2p), jnp.float32),             # sum(h)
                pltpu.VMEM((1, h2p), jnp.float32),             # sum(h^2)
            ],
        )
        dims = ("arbitrary",)              # sequential: shared stats + h cache
        flops = pass_flops + out_flops
        bytes_accessed = x.size * 4 + weight_io
    else:
        kernel = functools.partial(_mlp_d_two_phase_kernel, batch=batch,
                                   tile_b=tb, ragged=ragged)
        grid_spec = pltpu.PrefetchScalarGridSpec(
            num_scalar_prefetch=0,
            grid=(2, n_tiles),             # (phase, batch tile)
            in_specs=[pl.BlockSpec((tb, ninput), lambda p, t: (t, 0))]
                     + weight_specs,
            out_specs=pl.BlockSpec((1, nop), lambda p, t: (0, 0)),
            scratch_shapes=[
                pltpu.VMEM((1, h2p), jnp.float32),   # sum(h)   -> BN scale
                pltpu.VMEM((1, h2p), jnp.float32),   # sum(h^2) -> BN shift
                pltpu.VMEM((1, h2p), jnp.float32),   # batch sum of activations
            ],
        )
        dims = ("arbitrary", "arbitrary")
        flops = 2 * pass_flops + out_flops
        bytes_accessed = 2 * x.size * 4 + weight_io

    out = pl.pallas_call(
        kernel,
        out_shape=jax.ShapeDtypeStruct((1, nop), jnp.float32),
        grid_spec=grid_spec,
        compiler_params=pltpu.CompilerParams(
            dimension_semantics=dims,
            vmem_limit_bytes=vmem_limit),
        cost_estimate=pl.CostEstimate(flops=int(flops), transcendentals=int(h2p),
                                      bytes_accessed=int(bytes_accessed)),
    )(x, *weight_args)

    return out[0, :noutput]    # shape [noutput], matching torch.mean(..., dim=0)


# ---------------------------------------------------------------------------
# Parameter init (same shapes / scheme as MLP_D: weights ~ N(0, 0.02),
# biases = 0) and a pure-JAX reference in the PyTorch op order.
# ---------------------------------------------------------------------------
def init_params(key, ninput, hidden, noutput, init_std=0.02):
    h1, h2 = hidden
    k1, k2, k3, k4 = jax.random.split(key, 4)
    w1 = jax.random.normal(k1, (ninput, h1), jnp.float32) * init_std
    b1 = jnp.zeros((1, h1), jnp.float32)
    w2 = jax.random.normal(k2, (h1, h2), jnp.float32) * init_std
    b2 = jnp.zeros((1, h2), jnp.float32)
    g2 = jax.random.normal(k3, (1, h2), jnp.float32) * init_std
    be2 = jnp.zeros((1, h2), jnp.float32)
    wo = jax.random.normal(k4, (h2, noutput), jnp.float32) * init_std
    bo = jnp.zeros((1, noutput), jnp.float32)
    return (w1, b1, w2, b2, g2, be2, wo, bo)


def mlp_d_reference(x, params):
    """PyTorch op order (mean AFTER the output layer, two-pass BN), with the
    same bf16 rounding of matmul operands as the kernel."""
    (w1, b1, w2, b2, g2, be2, wo, bo) = params
    h = jnp.dot(x.astype(jnp.bfloat16), w1.astype(jnp.bfloat16),
                preferred_element_type=jnp.float32) + b1
    h = _leaky_relu(h)
    h = jnp.dot(h.astype(jnp.bfloat16), w2.astype(jnp.bfloat16),
                preferred_element_type=jnp.float32) + b2
    mu = jnp.mean(h, axis=0, keepdims=True)
    var = jnp.mean((h - mu) ** 2, axis=0, keepdims=True)
    h = (h - mu) * jax.lax.rsqrt(var + BN_EPS)
    h = _leaky_relu(h * g2 + be2)
    y = jnp.dot(h, wo.astype(jnp.bfloat16).astype(jnp.float32),
                preferred_element_type=jnp.float32) + bo
    return jnp.mean(y, axis=0)


if __name__ == "__main__":
    # Shapes consistent with MLP_D(ninput=32, noutput=8, layers="32-16",
    # activation=nn.LeakyReLU(0.2)).
    batch, ninput, hidden, noutput = 8, 32, (32, 16), 8

    key = jax.random.PRNGKey(0)
    kx, kp = jax.random.split(key)
    x = jax.random.normal(kx, (batch, ninput), jnp.float32)
    params = init_params(kp, ninput, hidden, noutput)

    ref = mlp_d_reference(x, params)

    # 1) Primary single-pass (cached-h) path.
    out = jax.block_until_ready(mlp_d_forward(x, params))
    assert out.shape == (noutput,), out.shape
    assert jnp.allclose(out, ref, atol=2e-4, rtol=2e-3), (out, ref)

    # 2) Two-phase recompute fallback (used when the h cache would not fit
    #    VMEM, e.g. very large batch on v7x).
    out2 = jax.block_until_ready(mlp_d_forward(x, params, force_two_phase=True))
    assert jnp.allclose(out2, ref, atol=2e-4, rtol=2e-3), (out2, ref)

    # 3) Multi-tile, ragged batch (exercises in-kernel masking + the cached
    #    fori_loop over several tiles).
    x2 = jax.random.normal(jax.random.PRNGKey(1), (37, ninput), jnp.float32)
    ref2 = mlp_d_reference(x2, params)
    out3 = jax.block_until_ready(mlp_d_forward(x2, params, tile_b=16))
    assert out3.shape == (noutput,), out3.shape
    assert jnp.allclose(out3, ref2, atol=2e-4, rtol=2e-3), (out3, ref2)

    print("KERNEL_OK")
</pallas_src>

<mosaic_0001>
module attributes {stable_mosaic.version = 11 : i64} {
  func.func @_mlp_d_cached_kernel(%arg0: i32, %arg1: memref<16x32xf32, #tpu.memory_space<vmem>>, %arg2: memref<32x128xbf16, #tpu.memory_space<vmem>>, %arg3: memref<1x128xf32, #tpu.memory_space<vmem>>, %arg4: memref<128x128xbf16, #tpu.memory_space<vmem>>, %arg5: memref<1x128xf32, #tpu.memory_space<vmem>>, %arg6: memref<1x128xf32, #tpu.memory_space<vmem>>, %arg7: memref<1x128xf32, #tpu.memory_space<vmem>>, %arg8: memref<128x128xbf16, #tpu.memory_space<vmem>>, %arg9: memref<1x128xf32, #tpu.memory_space<vmem>>, %arg10: memref<1x128xf32, #tpu.memory_space<vmem>>, %arg11: memref<1x16x128xf32, #tpu.memory_space<vmem>>, %arg12: memref<1x128xf32, #tpu.memory_space<vmem>>, %arg13: memref<1x128xf32, #tpu.memory_space<vmem>>) attributes {dimension_semantics = [#tpu.dimension_semantics<arbitrary>], iteration_bounds = array<i64: 1>, scalar_prefetch = 0 : i64, scratch_operands = 3 : i64, tpu.core_type = #tpu.core_type<tc>, window_params = [{transform_indices = @transform_0, window_bounds = array<i64: 16, 32>}, {pipeline_mode = #tpu.pipeline_mode<synchronous>, transform_indices = @transform_1, window_bounds = array<i64: 32, 128>}, {pipeline_mode = #tpu.pipeline_mode<synchronous>, transform_indices = @transform_2, window_bounds = array<i64: 1, 128>}, {pipeline_mode = #tpu.pipeline_mode<synchronous>, transform_indices = @transform_3, window_bounds = array<i64: 128, 128>}, {pipeline_mode = #tpu.pipeline_mode<synchronous>, transform_indices = @transform_4, window_bounds = array<i64: 1, 128>}, {pipeline_mode = #tpu.pipeline_mode<synchronous>, transform_indices = @transform_5, window_bounds = array<i64: 1, 128>}, {pipeline_mode = #tpu.pipeline_mode<synchronous>, transform_indices = @transform_6, window_bounds = array<i64: 1, 128>}, {pipeline_mode = #tpu.pipeline_mode<synchronous>, transform_indices = @transform_7, window_bounds = array<i64: 128, 128>}, {pipeline_mode = #tpu.pipeline_mode<synchronous>, transform_indices = @transform_8, window_bounds = array<i64: 1, 128>}, {pipeline_mode = #tpu.pipeline_mode<synchronous>, transform_indices = @transform_9, window_bounds = array<i64: 1, 128>}]} {
    %c0_i32 = arith.constant 0 : i32
    %0 = arith.cmpi eq, %arg0, %c0_i32 : i32
    %1 = arith.extui %0 : i1 to i32
    %c0_i32_0 = arith.constant 0 : i32
    %2 = arith.cmpi ne, %1, %c0_i32_0 : i32
    scf.if %2 {
      %cst_28 = arith.constant 0.000000e+00 : f32
      %53 = vector.broadcast %cst_28 : f32 to vector<1x128xf32>
      %c0_29 = arith.constant 0 : index
      %c0_30 = arith.constant 0 : index
      %54 = vector.load %arg12[%c0_29, %c0_30] : memref<1x128xf32, #tpu.memory_space<vmem>>, vector<1x128xf32>
      tpu.vector_store %arg12[%c0_29, %c0_30], %53 {strides = array<i32>} : memref<1x128xf32, #tpu.memory_space<vmem>>, vector<1x128xf32>,
      %cst_31 = arith.constant 0.000000e+00 : f32
      %55 = vector.broadcast %cst_31 : f32 to vector<1x128xf32>
      %c0_32 = arith.constant 0 : index
      %c0_33 = arith.constant 0 : index
      %56 = vector.load %arg13[%c0_32, %c0_33] : memref<1x128xf32, #tpu.memory_space<vmem>>, vector<1x128xf32>
      tpu.vector_store %arg13[%c0_32, %c0_33], %55 {strides = array<i32>} : memref<1x128xf32, #tpu.memory_space<vmem>>, vector<1x128xf32>,
    } else {
    }
    %c0 = arith.constant 0 : index
    %c0_1 = arith.constant 0 : index
    %3 = vector.load %arg1[%c0, %c0_1] : memref<16x32xf32, #tpu.memory_space<vmem>>, vector<16x32xf32>
    %c16_i32 = arith.constant 16 : i32
    %4 = arith.muli %arg0, %c16_i32 : i32
    %5 = tpu.iota {dimensions = array<i32: 0>} : vector<16x1xi32>
    %6 = vector.broadcast %4 : i32 to vector<16x1xi32>
    %7 = arith.addi %6, %5 : vector<16x1xi32>
    %c8_i32 = arith.constant 8 : i32
    %8 = vector.broadcast %c8_i32 : i32 to vector<16x1xi32>
    %9 = arith.cmpi slt, %7, %8 : vector<16x1xi32>
    %cst = arith.constant 0.000000e+00 : f32
    %10 = vector.shape_cast %9 : vector<16x1xi1> to vector<16x1xi1>
    %11 = vector.broadcast %10 : vector<16x1xi1> to vector<16x32xi1>
    %12 = vector.broadcast %cst : f32 to vector<16x32xf32>
    %13 = arith.select %11, %3, %12 : vector<16x32xi1>, vector<16x32xf32>
    %14 = arith.extui %9 : vector<16x1xi1> to vector<16x1xi32>
    %15 = arith.sitofp %14 : vector<16x1xi32> to vector<16x1xf32>
    %16 = arith.truncf %13 : vector<16x32xf32> to vector<16x32xbf16>
    %c0_2 = arith.constant 0 : index
    %c0_3 = arith.constant 0 : index
    %17 = vector.load %arg2[%c0_2, %c0_3] : memref<32x128xbf16, #tpu.memory_space<vmem>>, vector<32x128xbf16>
    %cst_4 = arith.constant dense<0.000000e+00> : vector<16x128xf32>
    %18 = tpu.matmul %16, %17, %cst_4 {dimension_numbers = #tpu.dot_dimension_numbers<[1], [0], [0], [1], [0, 0, 1, 1], [], []>} : vector<16x32xbf16>, vector<32x128xbf16>, vector<16x128xf32> -> vector<16x128xf32>
    %c0_5 = arith.constant 0 : index
    %c0_6 = arith.constant 0 : index
    %19 = vector.load %arg3[%c0_5, %c0_6] : memref<1x128xf32, #tpu.memory_space<vmem>>, vector<1x128xf32>
    %20 = vector.broadcast %19 : vector<1x128xf32> to vector<16x128xf32>
    %21 = arith.addf %18, %20 : vector<16x128xf32>
    %cst_7 = arith.constant 0.000000e+00 : f32
    %22 = vector.broadcast %cst_7 : f32 to vector<16x128xf32>
    %23 = arith.cmpf ogt, %21, %22 : vector<16x128xf32>
    %cst_8 = arith.constant 2.000000e-01 : f32
    %24 = vector.broadcast %cst_8 : f32 to vector<16x128xf32>
    %25 = arith.mulf %24, %21 : vector<16x128xf32>
    %26 = arith.select %23, %21, %25 : vector<16x128xi1>, vector<16x128xf32>
    %27 = arith.truncf %26 : vector<16x128xf32> to vector<16x128xbf16>
    %c0_9 = arith.constant 0 : index
    %c0_10 = arith.constant 0 : index
    %28 = vector.load %arg4[%c0_9, %c0_10] : memref<128x128xbf16, #tpu.memory_space<vmem>>, vector<128x128xbf16>
    %cst_11 = arith.constant dense<0.000000e+00> : vector<16x128xf32>
    %29 = tpu.matmul %27, %28, %cst_11 {dimension_numbers = #tpu.dot_dimension_numbers<[1], [0], [0], [1], [0, 0, 1, 1], [], []>} : vector<16x128xbf16>, vector<128x128xbf16>, vector<16x128xf32> -> vector<16x128xf32>
    %c0_12 = arith.constant 0 : index
    %c0_13 = arith.constant 0 : index
    %30 = vector.load %arg5[%c0_12, %c0_13] : memref<1x128xf32, #tpu.memory_space<vmem>>, vector<1x128xf32>
    %31 = vector.broadcast %30 : vector<1x128xf32> to vector<16x128xf32>
    %32 = arith.addf %29, %31 : vector<16x128xf32>
    %33 = vector.broadcast %15 : vector<16x1xf32> to vector<16x128xf32>
    %34 = arith.mulf %32, %33 : vector<16x128xf32>
    %c0_14 = arith.constant 0 : index
    %c0_15 = arith.constant 0 : index
    %35 = vector.load %arg12[%c0_14, %c0_15] : memref<1x128xf32, #tpu.memory_space<vmem>>, vector<1x128xf32>
    %cst_16 = arith.constant dense<0.000000e+00> : vector<128xf32>
    %36 = vector.multi_reduction <add>, %34, %cst_16 [0] : vector<16x128xf32> to vector<128xf32>
    %37 = vector.shape_cast %36 : vector<128xf32> to vector<1x128xf32>
    %38 = arith.addf %35, %37 : vector<1x128xf32>
    %c0_17 = arith.constant 0 : index
    %c0_18 = arith.constant 0 : index
    %39 = vector.load %arg12[%c0_17, %c0_18] : memref<1x128xf32, #tpu.memory_space<vmem>>, vector<1x128xf32>
    tpu.vector_store %arg12[%c0_17, %c0_18], %38 {strides = array<i32>} : memref<1x128xf32, #tpu.memory_space<vmem>>, vector<1x128xf32>,
    %c0_19 = arith.constant 0 : index
    %c0_20 = arith.constant 0 : index
    %40 = vector.load %arg13[%c0_19, %c0_20] : memref<1x128xf32, #tpu.memory_space<vmem>>, vector<1x128xf32>
    %41 = arith.mulf %34, %34 : vector<16x128xf32>
    %cst_21 = arith.constant dense<0.000000e+00> : vector<128xf32>
    %42 = vector.multi_reduction <add>, %41, %cst_21 [0] : vector<16x128xf32> to vector<128xf32>
    %43 = vector.shape_cast %42 : vector<128xf32> to vector<1x128xf32>
    %44 = arith.addf %40, %43 : vector<1x128xf32>
    %c0_22 = arith.constant 0 : index
    %c0_23 = arith.constant 0 : index
    %45 = vector.load %arg13[%c0_22, %c0_23] : memref<1x128xf32, #tpu.memory_space<vmem>>, vector<1x128xf32>
    tpu.vector_store %arg13[%c0_22, %c0_23], %44 {strides = array<i32>} : memref<1x128xf32, #tpu.memory_space<vmem>>, vector<1x128xf32>,
    %46 = arith.index_cast %arg0 : i32 to index
    %c0_24 = arith.constant 0 : index
    %c0_25 = arith.constant 0 : index
    %47 = vector.load %arg11[%46, %c0_24, %c0_25] : memref<1x16x128xf32, #tpu.memory_space<vmem>>, vector<1x16x128xf32>
    %48 = vector.shape_cast %47 : vector<1x16x128xf32> to vector<16x128xf32>
    %49 = vector.shape_cast %32 : vector<16x128xf32> to vector<1x16x128xf32>
    tpu.vector_store %arg11[%46, %c0_24, %c0_25], %49 {strides = array<i32>} : memref<1x16x128xf32, #tpu.memory_space<vmem>>, vector<1x16x128xf32>,
    %c0_i32_26 = arith.constant 0 : i32
    %50 = arith.cmpi eq, %arg0, %c0_i32_26 : i32
    %51 = arith.extui %50 : i1 to i32
    %c0_i32_27 = arith.constant 0 : i32
    %52 = arith.cmpi ne, %51, %c0_i32_27 : i32
    scf.if %52 {
      %c0_28 = arith.constant 0 : index
      %c0_29 = arith.constant 0 : index
      %53 = vector.load %arg12[%c0_28, %c0_29] : memref<1x128xf32, #tpu.memory_space<vmem>>, vector<1x128xf32>
      %cst_30 = arith.constant 1.250000e-01 : f32
      %54 = vector.broadcast %cst_30 : f32 to vector<1x128xf32>
      %55 = arith.mulf %53, %54 : vector<1x128xf32>
      %c0_31 = arith.constant 0 : index
      %c0_32 = arith.constant 0 : index
      %56 = vector.load %arg13[%c0_31, %c0_32] : memref<1x128xf32, #tpu.memory_space<vmem>>, vector<1x128xf32>
      %cst_33 = arith.constant 1.250000e-01 : f32
      %57 = vector.broadcast %cst_33 : f32 to vector<1x128xf32>
      %58 = arith.mulf %56, %57 : vector<1x128xf32>
      %59 = arith.mulf %55, %55 : vector<1x128xf32>
      %60 = arith.subf %58, %59 : vector<1x128xf32>
      %cst_34 = arith.constant 0.000000e+00 : f32
      %61 = vector.broadcast %cst_34 : f32 to vector<1x128xf32>
      %62 = arith.maximumf %60, %61 : vector<1x128xf32>
      %c0_35 = arith.constant 0 : index
      %c0_36 = arith.constant 0 : index
      %63 = vector.load %arg6[%c0_35, %c0_36] : memref<1x128xf32, #tpu.memory_space<vmem>>, vector<1x128xf32>
      %cst_37 = arith.constant 9.99999974E-6 : f32
      %64 = vector.broadcast %cst_37 : f32 to vector<1x128xf32>
      %65 = arith.addf %62, %64 : vector<1x128xf32>
      %66 = math.rsqrt %65 : vector<1x128xf32>
      %67 = arith.mulf %63, %66 : vector<1x128xf32>
      %c0_38 = arith.constant 0 : index
      %c0_39 = arith.constant 0 : index
      %68 = vector.load %arg7[%c0_38, %c0_39] : memref<1x128xf32, #tpu.memory_space<vmem>>, vector<1x128xf32>
      %69 = arith.mulf %55, %67 : vector<1x128xf32>
      %70 = arith.subf %68, %69 : vector<1x128xf32>
      %cst_40 = arith.constant 0.000000e+00 : f32
      %71 = vector.broadcast %cst_40 : f32 to vector<1x128xf32>
      %c0_i32_41 = arith.constant 0 : i32
      %72 = arith.index_cast %c0_i32_41 : i32 to index
      %c0_42 = arith.constant 0 : index
      %c0_43 = arith.constant 0 : index
      %73 = vector.load %arg11[%72, %c0_42, %c0_43] : memref<1x16x128xf32, #tpu.memory_space<vmem>>, vector<1x16x128xf32>
      %74 = vector.shape_cast %73 : vector<1x16x128xf32> to vector<16x128xf32>
      %75 = vector.broadcast %67 : vector<1x128xf32> to vector<16x128xf32>
      %76 = arith.mulf %74, %75 : vector<16x128xf32>
      %77 = vector.broadcast %70 : vector<1x128xf32> to vector<16x128xf32>
      %78 = arith.addf %76, %77 : vector<16x128xf32>
      %cst_44 = arith.constant 0.000000e+00 : f32
      %79 = vector.broadcast %cst_44 : f32 to vector<16x128xf32>
      %80 = arith.cmpf ogt, %78, %79 : vector<16x128xf32>
      %cst_45 = arith.constant 2.000000e-01 : f32
      %81 = vector.broadcast %cst_45 : f32 to vector<16x128xf32>
      %82 = arith.mulf %81, %78 : vector<16x128xf32>
      %83 = arith.select %80, %78, %82 : vector<16x128xi1>, vector<16x128xf32>
      %c16_i32_46 = arith.constant 16 : i32
      %84 = arith.muli %c0_i32_41, %c16_i32_46 : i32
      %85 = tpu.iota {dimensions = array<i32: 0>} : vector<16x1xi32>
      %86 = vector.broadcast %84 : i32 to vector<16x1xi32>
      %87 = arith.addi %86, %85 : vector<16x1xi32>
      %c8_i32_47 = arith.constant 8 : i32
      %88 = vector.broadcast %c8_i32_47 : i32 to vector<16x1xi32>
      %89 = arith.cmpi slt, %87, %88 : vector<16x1xi32>
      %90 = arith.extui %89 : vector<16x1xi1> to vector<16x1xi32>
      %91 = arith.sitofp %90 : vector<16x1xi32> to vector<16x1xf32>
      %92 = vector.broadcast %91 : vector<16x1xf32> to vector<16x128xf32>
      %93 = arith.mulf %83, %92 : vector<16x128xf32>
      %cst_48 = arith.constant dense<0.000000e+00> : vector<128xf32>
      %94 = vector.multi_reduction <add>, %93, %cst_48 [0] : vector<16x128xf32> to vector<128xf32>
      %95 = vector.shape_cast %94 : vector<128xf32> to vector<1x128xf32>
      %96 = arith.addf %71, %95 : vector<1x128xf32>
      %c1_i32 = arith.constant 1 : i32
      %cst_49 = arith.constant 1.250000e-01 : f32
      %97 = vector.broadcast %cst_49 : f32 to vector<1x128xf32>
      %98 = arith.mulf %96, %97 : vector<1x128xf32>
      %99 = arith.truncf %98 : vector<1x128xf32> to vector<1x128xbf16>
      %c0_50 = arith.constant 0 : index
      %c0_51 = arith.constant 0 : index
      %100 = vector.load %arg8[%c0_50, %c0_51] : memref<128x128xbf16, #tpu.memory_space<vmem>>, vector<128x128xbf16>
      %cst_52 = arith.constant dense<0.000000e+00> : vector<1x128xf32>
      %101 = tpu.matmul %99, %100, %cst_52 {dimension_numbers = #tpu.dot_dimension_numbers<[1], [0], [0], [1], [0, 0, 1, 1], [], []>} : vector<1x128xbf16>, vector<128x128xbf16>, vector<1x128xf32> -> vector<1x128xf32>
      %c0_53 = arith.constant 0 : index
      %c0_54 = arith.constant 0 : index
      %102 = vector.load %arg9[%c0_53, %c0_54] : memref<1x128xf32, #tpu.memory_space<vmem>>, vector<1x128xf32>
      %103 = arith.addf %101, %102 : vector<1x128xf32>
      %c0_55 = arith.constant 0 : index
      %c0_56 = arith.constant 0 : index
      %104 = vector.load %arg10[%c0_55, %c0_56] : memref<1x128xf32, #tpu.memory_space<vmem>>, vector<1x128xf32>
      tpu.vector_store %arg10[%c0_55, %c0_56], %103 {strides = array<i32>} : memref<1x128xf32, #tpu.memory_space<vmem>>, vector<1x128xf32>,
    } else {
    }
    return
  }
  func.func @transform_0(%arg0: i32) -> (i32, i32) {
    %c0_i32 = arith.constant 0 : i32
    %c0_i32_0 = arith.constant 0 : i32
    return %arg0, %c0_i32 : i32, i32
  }
  func.func @transform_1(%arg0: i32) -> (i32, i32) {
    %c0_i32 = arith.constant 0 : i32
    %c0_i32_0 = arith.constant 0 : i32
    %c0_i32_1 = arith.constant 0 : i32
    return %c0_i32, %c0_i32_0 : i32, i32
  }
  func.func @transform_2(%arg0: i32) -> (i32, i32) {
    %c0_i32 = arith.constant 0 : i32
    %c0_i32_0 = arith.constant 0 : i32
    %c0_i32_1 = arith.constant 0 : i32
    return %c0_i32, %c0_i32_0 : i32, i32
  }
  func.func @transform_3(%arg0: i32) -> (i32, i32) {
    %c0_i32 = arith.constant 0 : i32
    %c0_i32_0 = arith.constant 0 : i32
    %c0_i32_1 = arith.constant 0 : i32
    return %c0_i32, %c0_i32_0 : i32, i32
  }
  func.func @transform_4(%arg0: i32) -> (i32, i32) {
    %c0_i32 = arith.constant 0 : i32
    %c0_i32_0 = arith.constant 0 : i32
    %c0_i32_1 = arith.constant 0 : i32
    return %c0_i32, %c0_i32_0 : i32, i32
  }
  func.func @transform_5(%arg0: i32) -> (i32, i32) {
    %c0_i32 = arith.constant 0 : i32
    %c0_i32_0 = arith.constant 0 : i32
    %c0_i32_1 = arith.constant 0 : i32
    return %c0_i32, %c0_i32_0 : i32, i32
  }
  func.func @transform_6(%arg0: i32) -> (i32, i32) {
    %c0_i32 = arith.constant 0 : i32
    %c0_i32_0 = arith.constant 0 : i32
    %c0_i32_1 = arith.constant 0 : i32
    return %c0_i32, %c0_i32_0 : i32, i32
  }
  func.func @transform_7(%arg0: i32) -> (i32, i32) {
    %c0_i32 = arith.constant 0 : i32
    %c0_i32_0 = arith.constant 0 : i32
    %c0_i32_1 = arith.constant 0 : i32
    return %c0_i32, %c0_i32_0 : i32, i32
  }
  func.func @transform_8(%arg0: i32) -> (i32, i32) {
    %c0_i32 = arith.constant 0 : i32
    %c0_i32_0 = arith.constant 0 : i32
    %c0_i32_1 = arith.constant 0 : i32
    return %c0_i32, %c0_i32_0 : i32, i32
  }
  func.func @transform_9(%arg0: i32) -> (i32, i32) {
    %c0_i32 = arith.constant 0 : i32
    %c0_i32_0 = arith.constant 0 : i32
    %c0_i32_1 = arith.constant 0 : i32
    return %c0_i32, %c0_i32_0 : i32, i32
  }
}

</mosaic_0001>

<bundles_post_ra>
// kernel: tpu_custom_call.1
= control target key start
LH: loop header
LB: loop body
LE: loop exit
PB: predicated region body
PF: predicated region fallthrough
CT: control target
= control target key end

     0   :  { %14 = vsyncpa [#allocation6], 0  ;;  %s929_s0 = inlined_call_operand.hbm [shape: f32[8,32], index: 0, kind: input, shape index: {}]   ;;  %s930_s1 = inlined_call_operand.hbm [shape: bf16[32,128], index: 1, kind: input, shape index: {}]   ;;  %s931_s2 = inlined_call_operand.vmem [shape: f32[1,128], index: 2, kind: input, shape index: {}]   ;;  %s932_s3 = inlined_call_operand.hbm [shape: bf16[128,128], index: 3, kind: input, shape index: {}]   ;;  %s933_s4 = inlined_call_operand.vmem [shape: f32[1,128], index: 4, kind: input, shape index: {}]   ;;  %s934_s5 = inlined_call_operand.vmem [shape: f32[1,128], index: 5, kind: input, shape index: {}]   ;;  %s935_s6 = inlined_call_operand.vmem [shape: f32[1,128], index: 6, kind: input, shape index: {}]   ;;  %s936_s7 = inlined_call_operand.hbm [shape: bf16[128,128], index: 7, kind: input, shape index: {}]   ;;  %s937_s8 = inlined_call_operand.vmem [shape: f32[1,128], index: 8, kind: input, shape index: {}]   ;;  %s938_s9 = inlined_call_operand.hbm [shape: f32[1,128], index: 9, kind: output, shape index: {}]  }
   0x1   :  { %15 = vsyncpa [#allocation9], 0 }
   0x2   :  { %16 = vsyncpa [#allocation12], 0 }
   0x3   :  { %17 = vsyncpa [#allocation7], 0 }
   0x4   :  { %22 = vsyncadd [#allocation6], 128  ;;  %s750_s30 = smov [#allocation8]   ;;  %s632_s13 = scalar_lea.hbm %s930_s1, 256 }
   0x5   :  { %s35_s10 = sshll.u32 %s750_s30, 4  ;;  %p633_p0 = scmp.ne.s32.totalorder %s930_s1, %s632_s13  ;;  %s36_s10 = int_to_ptr.vmem [resolvable:$true] %s35_s10 }
   0x6   :  { %p636_p1 = scmp.lt.u32.totalorder %s632_s13, %s930_s1 }
   0x8   :  { %p638_p2 = pnand %p636_p1, %p633_p0 }
   0xa   :  { %641 = shalt.err (!%p638_p2)
}
   0xb   :  { %s642_s18 = scalar_lea.vmem %s36_s10, 256  ;;  %p647_p4 = scmp.lt.s32.totalorder %s36_s10, %s36_s10 }
   0xc   :  { %p643_p3 = scmp.ne.s32.totalorder %s36_s10, %s642_s18  ;;  %p648_p5 = scmp.lt.s32.totalorder %s642_s18, %s642_s18 }
   0xe   :  { %p649_p6 = por %p648_p5, %p647_p4 }
  0x10   :  { %p650_p7 = pnand %p649_p6, %p643_p3 }
  0x12   :  { %653 = shalt.err (!%p650_p7)
}
  0x13   :  { %s751_s19 = smov 64   ;;  %s752_s20 = smov 4  }
  0x14   :  { %41 = dma.hbm_to_vmem [thread:$0]  %s930_s1, 256, %s36_s10, [#allocation9], %s751_s19, %s751_s19, %s752_s20  }
  0x15   :  { %s753_s23 = smov [#allocation5]   ;;  %s654_s27 = scalar_lea.hbm %s929_s0, 128 }
  0x16   :  { %s23_s24 = sshll.u32 %s753_s23, 4  ;;  %p655_p8 = scmp.ne.s32.totalorder %s929_s0, %s654_s27  ;;  %s24_s24 = int_to_ptr.vmem [resolvable:$true] %s23_s24 }
  0x17   :  { %p658_p9 = scmp.lt.u32.totalorder %s654_s27, %s929_s0 }
  0x19   :  { %p660_p10 = pnand %p658_p9, %p655_p8 }
  0x1b   :  { %663 = shalt.err (!%p660_p10)
}
  0x1c   :  { %s664_s12 = scalar_lea.vmem %s24_s24, 128  ;;  %s668_s1 = scalar_lea.vmem %s24_s24, 256 }
  0x1d   :  { %p665_p11 = scmp.ne.s32.totalorder %s24_s24, %s664_s12  ;;  %p669_p12 = scmp.lt.s32.totalorder %s24_s24, %s24_s24 }
  0x1e   :  { %p670_p13 = scmp.lt.s32.totalorder %s668_s1, %s664_s12 }
  0x20   :  { %p671_p0 = por %p670_p13, %p669_p12 }
  0x22   :  { %p672_p1 = pnand %p671_p0, %p665_p11 }
  0x24   :  { %675 = shalt.err (!%p672_p1)
}
  0x25   :  { %s754_s10 = smov 128   ;;  %s755_s13 = smov 8  }
  0x26   :  { %29 = dma.hbm_to_vmem [thread:$0]  %s929_s0, 128, %s24_s24, [#allocation6], %s754_s10, %s754_s10, %s755_s13  }
  0x27   :  { %s756_s16 = smov [#allocation10]   ;;  %s757_s18 = smov [#allocation11]  }
  0x28   :  { %s49_s17 = sshll.u32 %s756_s16, 4  ;;  %s67_s21 = sshll.u32 %s757_s18, 4  ;;  %s50_s17 = int_to_ptr.vmem [resolvable:$true] %s49_s17  ;;  %s838_s21 = int_to_ptr.vmem [resolvable:$true] %s67_s21 }
  0x29   :  { %s676_s25 = scalar_lea.hbm %s932_s3, 1024 }
  0x2a   :  { %p677_p2 = scmp.ne.s32.totalorder %s932_s3, %s676_s25  ;;  %p680_p3 = scmp.lt.u32.totalorder %s676_s25, %s932_s3 }
  0x2c   :  { %p682_p4 = pnand %p680_p3, %p677_p2 }
  0x2e   :  { %685 = shalt.err (!%p682_p4)
}
  0x2f   :  { %s686_s0 = scalar_lea.vmem %s50_s17, 1024  ;;  %p691_p6 = scmp.lt.s32.totalorder %s50_s17, %s50_s17 }
  0x30   :  { %p687_p5 = scmp.ne.s32.totalorder %s50_s17, %s686_s0  ;;  %p692_p7 = scmp.lt.s32.totalorder %s686_s0, %s686_s0 }
  0x32   :  { %p693_p8 = por %p692_p7, %p691_p6 }
  0x34   :  { %p694_p9 = pnand %p693_p8, %p687_p5 }
  0x36   :  { %697 = shalt.err (!%p694_p9)
}
  0x37   :  { %55 = dma.hbm_to_vmem [thread:$0]  %s932_s3, 1024, %s50_s17, [#allocation9], %s751_s19, %s751_s19, %s752_s20  }
  0x38   :  { %s698_s1 = scalar_lea.hbm %s936_s7, 1024 }
  0x39   :  { %p699_p10 = scmp.ne.s32.totalorder %s936_s7, %s698_s1  ;;  %p702_p11 = scmp.lt.u32.totalorder %s698_s1, %s936_s7 }
  0x3b   :  { %p704_p12 = pnand %p702_p11, %p699_p10 }
  0x3d   :  { %707 = shalt.err (!%p704_p12)
}
  0x3e   :  { %s708_s16 = scalar_lea.vmem %s838_s21, 1024  ;;  %p713_p0 = scmp.lt.s32.totalorder %s838_s21, %s838_s21 }
  0x3f   :  { %p709_p13 = scmp.ne.s32.totalorder %s838_s21, %s708_s16  ;;  %p714_p1 = scmp.lt.s32.totalorder %s708_s16, %s708_s16 }
  0x41   :  { %p715_p2 = por %p714_p1, %p713_p0 }
  0x43   :  { %p716_p3 = pnand %p715_p2, %p709_p13 }
  0x45   :  { %719 = shalt.err (!%p716_p3)
}
  0x46   :  { %73 = dma.hbm_to_vmem [thread:$0]  %s936_s7, 1024, %s838_s21, [#allocation12], %s751_s19, %s751_s19, %s752_s20  }
  0x47   :  { %742 = dma.done.wait [#allocation6], 256  }
  0x48   :  { %743 = vsyncadd [#allocation6], 4294967040 }
  0x49   :  { %744 = dma.done.wait [#allocation9], 1280  }
  0x4a   :  { %745 = vsyncadd [#allocation9], 4294966016 }
  0x4b   :  { %746 = dma.done.wait [#allocation12], 1024  }
  0x4c   :  { %747 = vsyncadd [#allocation12], 4294966272  ;;  %v758_v0 = vmov 0.0   ;;  %vm759_vm0 = vmmov 0   ;;  %v612_v1 = vld [vmem:[#allocation8] sm:$0xff]   ;;  %v613_v2 = vld [vmem:[#allocation8 + $0x8] sm:$0xff]  }
  0x4d   :  { %553 = vmatprep.subr.bf16.mxu0 %v758_v0  ;;  %93 = vst [vmem:[#allocation3] sm:$0x1] %v758_v0  ;;  %94 = vst [vmem:[#allocation4] sm:$0x1] %v758_v0  ;;  %557 = vmatprep.mubr.msk.bf16.mxu0 %vm759_vm0, %v758_v0  ;;  %v95_v3 = vld [vmem:[#allocation5] sm:$0xff]  ;;  %v615_v6 = vld [vmem:[#allocation10 + $0x8] sm:$0xff]  }
  0x4e   :  { %561 = vmatprep.subr.bf16.mxu1 %v758_v0  ;;  %577 = vmatprep.mubr.msk.bf16.mxu1 %vm759_vm0, %v758_v0  ;;  %v614_v4 = vld [vmem:[#allocation10] sm:$0xff]   ;;  %v114_v5 = vpack.c.bf16 %v758_v0, %v95_v3  ;;  %vm138_vm1 = vcmask 261120   ;;  %v616_v7 = vld [vmem:[#allocation10 + $0x10] sm:$0xff]   ;;  %v617_v8 = vld [vmem:[#allocation10 + $0x18] sm:$0xff]   ;;  %s760_s23 = smov [#allocation13]  }
  0x4f   :  { %554 = vmatpush3.bf16.msra.mxu0 %v612_v1  ;;  %562 = vmatpush3.bf16.msra.mxu1 %v614_v4  ;;  %v618_v9 = vld [vmem:[#allocation10 + $0x20] sm:$0xff]   ;;  %v619_v10 = vld [vmem:[#allocation10 + $0x28] sm:$0xff]   ;;  %v620_v11 = vld [vmem:[#allocation10 + $0x30] sm:$0xff]   ;;  %s500_s25 = sshll.u32 %s760_s23, 4  ;;  %s501_s25 = int_to_ptr.vmem [resolvable:$true] %s500_s25 }
  0x50   :  { %555 = vmatprep.subr.bf16.mxu0 %v758_v0  ;;  %563 = vmatprep.subr.bf16.mxu1 %v758_v0  ;;  %v621_v12 = vld [vmem:[#allocation10 + $0x38] sm:$0xff]   ;;  %v622_v25 = vld [vmem:[#allocation11] sm:$0xff]   ;;  %v623_v26 = vld [vmem:[#allocation11 + $0x8] sm:$0xff]   ;;  %s720_s26 = scalar_lea.vmem %s501_s25, 16  ;;  %s724_s27 = scalar_lea.vmem %s501_s25, 32 }
  0x51   :  { %v511_v13 = vld [vmem:[%s931_s2] ss:$0 sm:$0xff]  ;;  %v624_v27 = vld [vmem:[#allocation11 + $0x10] sm:$0xff]   ;;  %v626_v29 = vld [vmem:[#allocation11 + $0x20] sm:$0xff]   ;;  %p721_p4 = scmp.ne.s32.totalorder %s501_s25, %s720_s26  ;;  %p725_p5 = scmp.lt.s32.totalorder %s501_s25, %s501_s25 }
  0x52   :  { %v625_v28 = vld [vmem:[#allocation11 + $0x18] sm:$0xff]   ;;  %v627_v30 = vld [vmem:[#allocation11 + $0x28] sm:$0xff]   ;;  %v628_v31 = vld [vmem:[#allocation11 + $0x30] sm:$0xff]   ;;  %p726_p6 = scmp.lt.s32.totalorder %s724_s27, %s720_s26 }
  0x53   :  { %556 = vmatpush3.bf16.msra.mxu0 %v613_v2  ;;  %564 = vmatpush3.bf16.msra.mxu1 %v615_v6  ;;  %v629_v32 = vld [vmem:[#allocation11 + $0x38] sm:$0xff]  }
  0x54   :  { %581 = vmatprep.subr.bf16.mxu0 %v758_v0  ;;  %565 = vmatprep.subr.bf16.mxu1 %v758_v0  ;;  %v515_v33 = vld [vmem:[%s933_s4] ss:$0 sm:$0xff]  ;;  %v314_v57 = vld [vmem:[#allocation4] sm:$0x1]  ;;  %p727_p7 = por %p726_p6, %p725_p5 }
  0x55   :  { %v304_v54 = vld [vmem:[#allocation3] sm:$0x1] }
  0x56   :  { %558 = vmatmul.mubr.msk.bf16.vlgmr.msra.gmra.mrb[0].mxu0 %vm138_vm1, %v114_v5  ;;  %v349_v5 = vlaneseq  ;;  %p728_p8 = pnand %p727_p7, %p721_p4 }
  0x57   :  { %597 = vmatprep.mubr.msk.bf16.mxu0 %vm759_vm0, %v758_v0  ;;  %566 = vmatpush3.bf16.msra.mxu1 %v616_v7  ;;  %v339_v7 = vld [vmem:[%s934_s5] sm:$0x1] }
  0x58   :  { %567 = vmatprep.subr.bf16.mxu1 %v758_v0  ;;  %582 = vmatpush3.bf16.msra.mxu0 %v622_v25  ;;  %v350_v6 = vshrl.u32 %v349_v5, 7 }
  0x59   :  { %583 = vmatprep.subr.bf16.mxu0 %v758_v0 }
  0x5b   :  { %568 = vmatpush3.bf16.msra.mxu1 %v617_v8  ;;  %v351_v8 = vsub.s32 0, %v350_v6 }
  0x5c   :  { %569 = vmatprep.subr.bf16.mxu1 %v758_v0  ;;  %584 = vmatpush3.bf16.msra.mxu0 %v623_v26 }
  0x5d   :  { %585 = vmatprep.subr.bf16.mxu0 %v758_v0 }
  0x5f   :  { %570 = vmatpush3.bf16.msra.mxu1 %v618_v9 }
  0x60   :  { %571 = vmatprep.subr.bf16.mxu1 %v758_v0  ;;  %586 = vmatpush3.bf16.msra.mxu0 %v624_v27 }
  0x61   :  { %587 = vmatprep.subr.bf16.mxu0 %v758_v0 }
  0x63   :  { %572 = vmatpush3.bf16.msra.mxu1 %v619_v10 }
  0x64   :  { %573 = vmatprep.subr.bf16.mxu1 %v758_v0  ;;  %588 = vmatpush3.bf16.msra.mxu0 %v625_v28 }
  0x65   :  { %589 = vmatprep.subr.bf16.mxu0 %v758_v0 }
  0x67   :  { %574 = vmatpush3.bf16.msra.mxu1 %v620_v11  ;;  %v343_v11 = vld [vmem:[%s935_s6] sm:$0x1] }
  0x68   :  { %575 = vmatprep.subr.bf16.mxu1 %v758_v0  ;;  %590 = vmatpush3.bf16.msra.mxu0 %v626_v29 }
  0x69   :  { %591 = vmatprep.subr.bf16.mxu0 %v758_v0 }
  0x6b   :  { %576 = vmatpush3.bf16.msra.mxu1 %v621_v12 }
  0x6c   :  { %592 = vmatpush3.bf16.msra.mxu0 %v627_v30 }
  0x6d   :  { %593 = vmatprep.subr.bf16.mxu0 %v758_v0 }
  0x70   :  { %594 = vmatpush3.bf16.msra.mxu0 %v628_v31 }
  0x71   :  { %595 = vmatprep.subr.bf16.mxu0 %v758_v0 }
  0x74   :  { %596 = vmatpush3.bf16.msra.mxu0 %v629_v32 }
 0x129   :  { %v176_v14 = vpop.f32.mrb[0].mxu0 }
 0x12a   :  { %v177_v15 = vadd.f32 %v511_v13, %v176_v14  ;;  %v559_v16 = vpop.f32.mrb[1].mxu0 }
 0x12b   :  { %v179_v17 = vpop.f32.mrb[2].mxu0 }
 0x12c   :  { %v185_v18 = vmul.f32 0.2, %v177_v15  ;;  %v180_v19 = vadd.f32 %v511_v13, %v179_v17  ;;  %v560_v20 = vpop.f32.mrb[3].mxu0  ;;  %vm183_vm2 = vcmp.gt.f32.partialorder %v177_v15, 0.0 }
 0x12e   :  { %vm184_vm3 = vcmp.gt.f32.partialorder %v180_v19, 0.0  ;;  %v186_v21 = vmul.f32 0.2, %v180_v19  ;;  %v187_v22 = vsel %vm183_vm2, %v177_v15, %v185_v18 }
 0x130   :  { %v188_v23 = vsel %vm184_vm3, %v180_v19, %v186_v21 }
 0x131   :  { %v189_v24 = vpack.c.bf16 %v188_v23, %v187_v22 }
 0x133   :  { %578 = vmatmul.mubr.bf16.vlgmr.msra.gmra.mrb[0].mxu1 %v189_v24 }
 0x206   :  { %v295_v34 = vpop.f32.mrb[0].mxu1 }
 0x207   :  { %v579_v35 = vpop.f32.mrb[1].mxu1  ;;  %v296_v37 = vadd.f32 %v515_v33, %v295_v34  ;;  %v404_v34 = vld [vmem:[%s937_s8] sm:$0x1] }
 0x208   :  { %v298_v36 = vpop.f32.mrb[2].mxu1 }
 0x209   :  { %v299_v38 = vadd.f32 %v515_v33, %v298_v36  ;;  %v580_v39 = vpop.f32.mrb[3].mxu1  ;;  %v315_v41 = vmul.f32 %v296_v37, %v296_v37 }
 0x20b   :  { %v303_v40 = vmul.f32 0.0, %v299_v38 }
 0x20d   :  { %v305_v42 = vadd.f32 %v303_v40, %v296_v37  ;;  %v316_v43 = vmul.f32 %v303_v40, %v303_v40 }
 0x20f   :  { %v306_v44 = vrot.slane %v305_v42, 4  ;;  %v317_v45 = vadd.f32 %v316_v43, %v315_v41 }
 0x211   :  { %v307_v46 = vadd.f32 %v306_v44, %v305_v42  ;;  %v318_v47 = vrot.slane %v317_v45, 4 }
 0x213   :  { %v308_v48 = vrot.slane %v307_v46, 2  ;;  %v319_v49 = vadd.f32 %v318_v47, %v317_v45 }
 0x215   :  { %v309_v50 = vadd.f32 %v308_v48, %v307_v46  ;;  %v320_v51 = vrot.slane %v319_v49, 2 }
 0x217   :  { %v310_v52 = vrot.slane %v309_v50, 1  ;;  %v321_v53 = vadd.f32 %v320_v51, %v319_v49 }
 0x219   :  { %v311_v55 = vadd.f32 %v310_v52, %v309_v50  ;;  %v322_v56 = vrot.slane %v321_v53, 1 }
 0x21b   :  { %v312_v58 = vadd.f32 %v311_v55, %v304_v54  ;;  %v323_v59 = vadd.f32 %v322_v56, %v321_v53 }
 0x21d   :  { %313 = vst [vmem:[#allocation3] sm:$0x1] %v312_v58  ;;  %v324_v60 = vadd.f32 %v323_v59, %v314_v57 }
 0x21f   :  { %325 = vst [vmem:[#allocation4] sm:$0x1] %v324_v60 }
 0x224   :  { %v332_v61 = vld [vmem:[#allocation3] sm:$0x1] }
 0x225   :  { %v333_v62 = vmul.f32 0.125, %v332_v61 }
 0x226   :  { %v334_v63 = vld [vmem:[#allocation4] sm:$0x1] }
 0x227   :  { %v335_v0 = vmul.f32 0.125, %v334_v63  ;;  %v336_v1 = vmul.f32 %v333_v62, %v333_v62 }
 0x229   :  { %v337_v2 = vsub.f32 %v335_v0, %v336_v1 }
 0x22b   :  { %v338_v3 = vmax.f32 %v337_v2, 0.0 }
 0x22d   :  { %v340_v4 = vadd.f32 1e-05, %v338_v3 }
 0x22f   :  { %630 = vrsqrt.f32 %v340_v4 }
 0x239   :  { %v631_v9 = vpop.eup %630 }
 0x23a   :  { %v342_v10 = vmul.f32 %v631_v9, %v339_v7 }
 0x23c   :  { %v344_v12 = vmul.f32 %v342_v10, %v333_v62  ;;  %v352_v13 = vrot.slane %v342_v10, %v351_v8 }
 0x23e   :  { %v345_v14 = vsub.f32 %v343_v11, %v344_v12  ;;  %v354_v15 = vmul.f32 %v352_v13, %v296_v37  ;;  %v355_v16 = vmul.f32 %v352_v13, %v299_v38 }
 0x240   :  { %v360_v17 = vrot.slane %v345_v14, %v351_v8 }
 0x242   :  { %v362_v18 = vadd.f32 %v360_v17, %v354_v15  ;;  %v363_v19 = vadd.f32 %v360_v17, %v355_v16 }
 0x244   :  { %vm365_vm4 = vcmp.gt.f32.partialorder %v363_v19, 0.0  ;;  %v366_v20 = vmul.f32 0.2, %v362_v18  ;;  %v367_v21 = vmul.f32 0.2, %v363_v19  ;;  %vm364_vm5 = vcmp.gt.f32.partialorder %v362_v18, 0.0 }
 0x246   :  { %v369_v22 = vsel %vm365_vm4, %v363_v19, %v367_v21  ;;  %v368_v24 = vsel %vm364_vm5, %v362_v18, %v366_v20 }
 0x247   :  { %v377_v23 = vmul.f32 0.0, %v369_v22 }
 0x249   :  { %v378_v25 = vadd.f32 %v377_v23, %v368_v24 }
 0x24b   :  { %v379_v26 = vrot.slane %v378_v25, 4 }
 0x24d   :  { %v380_v27 = vadd.f32 %v379_v26, %v378_v25 }
 0x24f   :  { %v381_v28 = vrot.slane %v380_v27, 2 }
 0x251   :  { %v382_v29 = vadd.f32 %v381_v28, %v380_v27 }
 0x253   :  { %v383_v30 = vrot.slane %v382_v29, 1 }
 0x255   :  { %v384_v31 = vadd.f32 %v383_v30, %v382_v29 }
 0x257   :  { %v386_v32 = vmul.f32 0.125, %v384_v31 }
 0x259   :  { %v387_v33 = vpack.c.bf16 %v386_v32, %v386_v32 }
 0x25b   :  { %598 = vmatmul.mubr.bf16.vlgmr.msra.gmra.mrb[4].mxu0 %v387_v33 }
 0x32e   :  { %v487_v35 = vpop.f32.mrb[4].mxu0 }
 0x32f   :  { %v488_v36 = vadd.f32 %v487_v35, %v404_v34  ;;  %v599_v37 = vpop.f32.mrb[5].mxu0 }
 0x330   :  { %v490_v38 = vpop.f32.mrb[6].mxu0 }
 0x331   :  { %493 = vst [vmem:[#allocation13] sm:$0x1] %v488_v36  ;;  %v600_v39 = vpop.f32.mrb[7].mxu0 }
 0x332   :  { %731 = shalt.err (!%p728_p8)
}
 0x333   :  { %s732_s8 = scalar_lea.hbm %s938_s9, 16 }
 0x334   :  { %p733_p9 = scmp.ne.s32.totalorder %s938_s9, %s732_s8  ;;  %p736_p10 = scmp.lt.u32.totalorder %s732_s8, %s938_s9 }
 0x336   :  { %p738_p11 = pnand %p736_p10, %p733_p9 }
 0x338   :  { %741 = shalt.err (!%p738_p11)
}
 0x339   :  { %503 = dma.vmem_to_hbm [thread:$0]  %s501_s25, 16, %s938_s9, [#allocation7]  }
 0x33a   :  { %748 = dma.done.wait [#allocation7], 16  }
 0x33b   :  { %749 = vsyncadd [#allocation7], 4294967280 }
 0x33c   :  { %507 = vsyncpa [#allocation6], 1 }
 0x33d   :  { %508 = vsyncpa [#allocation9], 1 }
 0x33e   :  { %509 = vsyncpa [#allocation12], 1 }
 0x33f   :  { %510 = vsyncpa [#allocation7], 1 }

</bundles_post_ra>
